<compile_context>
chip_gen: v6e
topology: v6e:2x2x1
jax: 0.10.0
libtpu: 0.0.40
codegen_flags: <defaults>
</compile_context>

<pallas_src>
import jax
import jax.numpy as jnp
from jax.experimental import pallas as pl
from jax.experimental.pallas import tpu as pltpu  # noqa: F401  (imported for TPU backend availability)

# Problem sizes consistent with the module: Conv2d(3, 6, kernel_size=3, stride=1, padding=0)
N, C_IN, H, W = 2, 3, 16, 16
C_OUT, KH, KW = 6, 3, 3
H_OUT, W_OUT = H - KH + 1, W - KW + 1          # stride=1, padding=0 -> 14, 14

C_PAD = 8                                      # pad C_OUT to 8 sublanes for full-sublane stores
K_DIM = C_IN * KH * KW                         # 27 (contraction)
K_AUG = K_DIM + 1                              # +1 row of ones to fold the bias in
M_DIM = N * H_OUT * W_OUT                      # 392 lane-dense output width


def conv2d_matmul_kernel(w_ref, p_ref, o_ref):
    # w_ref: (C_PAD, K_AUG)   weights with bias column, zero-padded rows 6..7
    # p_ref: (K_AUG, M_DIM)   im2col patches with a trailing ones-row
    # o_ref: (C_PAD, M_DIM)   lane-dense output slab
    o_ref[...] = jnp.dot(
        w_ref[...], p_ref[...], preferred_element_type=jnp.float32
    ).astype(o_ref.dtype)


def _im2col(x):
    """(N, C_IN, H, W) -> (C_IN*KH*KW, N*H_OUT*W_OUT), contraction ordered (ci, kh, kw)."""
    cols = [x[:, :, kh:kh + H_OUT, kw:kw + W_OUT]          # each (N, C_IN, H_OUT, W_OUT)
            for kh in range(KH) for kw in range(KW)]
    p = jnp.stack(cols, axis=2)                            # (N, C_IN, KH*KW, H_OUT, W_OUT)
    p = p.transpose(1, 2, 0, 3, 4)                         # (C_IN, KH*KW, N, H_OUT, W_OUT)
    return p.reshape(K_DIM, M_DIM)


def conv2d_pallas(x, weight, bias):
    """x: (N, C_IN, H, W) f32; weight: (C_OUT, C_IN, KH, KW); bias: (C_OUT,). Returns NCHW."""
    # ---- wrapper-side layout prep (pure JAX) ----
    patches = _im2col(x)                                               # (27, 392)
    ones_row = jnp.ones((1, M_DIM), patches.dtype)
    patches_aug = jnp.concatenate([patches, ones_row], axis=0)         # (28, 392)

    w2d = weight.reshape(C_OUT, K_DIM)                                 # (6, 27), (ci,kh,kw) order
    w_aug = jnp.concatenate([w2d, bias[:, None]], axis=1)              # (6, 28)  bias column
    w_pad = jnp.zeros((C_PAD, K_AUG), w_aug.dtype).at[:C_OUT].set(w_aug)  # (8, 28)

    # ---- single grid-less pallas_call: one MXU matmul covers the whole batch ----
    out2d = pl.pallas_call(
        conv2d_matmul_kernel,
        out_shape=jax.ShapeDtypeStruct((C_PAD, M_DIM), x.dtype),
        in_specs=[
            pl.BlockSpec((C_PAD, K_AUG), lambda: (0, 0)),
            pl.BlockSpec((K_AUG, M_DIM), lambda: (0, 0)),
        ],
        out_specs=pl.BlockSpec((C_PAD, M_DIM), lambda: (0, 0)),
        cost_estimate=pl.CostEstimate(
            flops=2 * C_PAD * K_AUG * M_DIM,
            transcendentals=0,
            bytes_accessed=4 * (C_PAD * K_AUG + K_AUG * M_DIM + C_PAD * M_DIM),
        ),
    )(w_pad, patches_aug)

    # ---- back to NCHW, dropping the sublane padding ----
    out = out2d[:C_OUT].reshape(C_OUT, N, H_OUT, W_OUT).transpose(1, 0, 2, 3)
    return out


if __name__ == "__main__":
    key = jax.random.PRNGKey(0)
    kx, kw, kb = jax.random.split(key, 3)

    # Deterministic parameter init mimicking PyTorch Conv2d default (uniform in +/- 1/sqrt(fan_in)).
    fan_in = C_IN * KH * KW
    bound = 1.0 / (fan_in ** 0.5)
    weight = jax.random.uniform(kw, (C_OUT, C_IN, KH, KW), jnp.float32, -bound, bound)
    bias = jax.random.uniform(kb, (C_OUT,), jnp.float32, -bound, bound)

    x = jax.random.normal(kx, (N, C_IN, H, W), jnp.float32)

    out = conv2d_pallas(x, weight, bias)
    out = jax.block_until_ready(out)

    # Sanity check against the XLA reference conv (NCHW / OIHW, VALID padding).
    ref = jax.lax.conv_general_dilated(
        x, weight, window_strides=(1, 1), padding="VALID",
        dimension_numbers=("NCHW", "OIHW", "NCHW"),
    ) + bias.reshape(1, C_OUT, 1, 1)
    assert out.shape == (N, C_OUT, H_OUT, W_OUT)
    assert jnp.allclose(out, ref, atol=1e-4, rtol=1e-4)

    print("KERNEL_OK")
</pallas_src>

<mosaic_0001>
module attributes {stable_mosaic.version = 11 : i64} {
  func.func @conv2d_matmul_kernel(%arg0: memref<8x28xf32, #tpu.memory_space<vmem>>, %arg1: memref<28x392xf32, #tpu.memory_space<vmem>>, %arg2: memref<8x392xf32, #tpu.memory_space<vmem>>) attributes {dimension_semantics = [], scalar_prefetch = 0 : i64, scratch_operands = 0 : i64, tpu.core_type = #tpu.core_type<tc>} {
    %c0 = arith.constant 0 : index
    %c0_0 = arith.constant 0 : index
    %0 = vector.load %arg0[%c0, %c0_0] : memref<8x28xf32, #tpu.memory_space<vmem>>, vector<8x28xf32>
    %c0_1 = arith.constant 0 : index
    %c0_2 = arith.constant 0 : index
    %1 = vector.load %arg1[%c0_1, %c0_2] : memref<28x392xf32, #tpu.memory_space<vmem>>, vector<28x392xf32>
    %cst = arith.constant dense<0.000000e+00> : vector<8x392xf32>
    %2 = tpu.matmul %0, %1, %cst {dimension_numbers = #tpu.dot_dimension_numbers<[1], [0], [0], [1], [0, 0, 1, 1], [], []>} : vector<8x28xf32>, vector<28x392xf32>, vector<8x392xf32> -> vector<8x392xf32>
    %c0_3 = arith.constant 0 : index
    %c0_4 = arith.constant 0 : index
    %3 = vector.load %arg2[%c0_3, %c0_4] : memref<8x392xf32, #tpu.memory_space<vmem>>, vector<8x392xf32>
    tpu.vector_store %arg2[%c0_3, %c0_4], %2 {strides = array<i32>} : memref<8x392xf32, #tpu.memory_space<vmem>>, vector<8x392xf32>,
    return
  }
}

</mosaic_0001>

<bundles_post_ra>
// kernel: tpu_custom_call.1
= control target key start
LH: loop header
LB: loop body
LE: loop exit
PB: predicated region body
PF: predicated region fallthrough
CT: control target
= control target key end

     0   :  { %7 = vsyncpa [#allocation3], 0  ;;  %s343_s0 = inlined_call_operand.hbm [shape: f32[8,28], index: 0, kind: input, shape index: {}]   ;;  %s344_s1 = inlined_call_operand.hbm [shape: f32[28,392], index: 1, kind: input, shape index: {}]   ;;  %s345_s2 = inlined_call_operand.hbm [shape: f32[8,392], index: 2, kind: output, shape index: {}]  }
   0x1   :  { %8 = vsyncpa [#allocation6], 0 }
   0x2   :  { %9 = vsyncpa [#allocation4], 0  ;;  %s313_s9 = smov [#allocation2]   ;;  %s314_s11 = smov [#allocation5]  }
   0x3   :  { %s16_s10 = sshll.u32 %s313_s9, 4  ;;  %s25_s12 = sshll.u32 %s314_s11, 4  ;;  %s17_s10 = int_to_ptr.vmem [resolvable:$true] %s16_s10  ;;  %s26_s12 = int_to_ptr.vmem [resolvable:$true] %s25_s12 }
   0x4   :  { %s255_s13 = scalar_lea.vmem %s17_s10, 128  ;;  %p260_p1 = scmp.lt.s32.totalorder %s17_s10, %s17_s10 }
   0x5   :  { %p256_p0 = scmp.ne.s32.totalorder %s17_s10, %s255_s13  ;;  %p261_p2 = scmp.lt.s32.totalorder %s255_s13, %s255_s13 }
   0x7   :  { %p262_p3 = por %p261_p2, %p260_p1 }
   0x9   :  { %p263_p4 = pnand %p262_p3, %p256_p0 }
   0xb   :  { %266 = shalt.err (!%p263_p4)
}
   0xc   :  { %19 = dma.hbm_to_vmem [thread:$0]  %s343_s0, 128, %s17_s10, [#allocation3]  }
   0xd   :  { %s275_s16 = scalar_lea.vmem %s26_s12, 2048  ;;  %p280_p6 = scmp.lt.s32.totalorder %s26_s12, %s26_s12 }
   0xe   :  { %p276_p5 = scmp.ne.s32.totalorder %s26_s12, %s275_s16  ;;  %p281_p7 = scmp.lt.s32.totalorder %s275_s16, %s275_s16 }
  0x10   :  { %p282_p8 = por %p281_p7, %p280_p6 }
  0x12   :  { %p283_p9 = pnand %p282_p8, %p276_p5 }
  0x14   :  { %286 = shalt.err (!%p283_p9)
}
  0x15   :  { %s315_s17 = smov 512   ;;  %s316_s18 = smov 32  }
  0x16   :  { %31 = dma.hbm_to_vmem [thread:$0]  %s344_s1, 2048, %s26_s12, [#allocation6], %s315_s17, %s315_s17, %s316_s18  }
  0x17   :  { %307 = dma.done.wait [#allocation3], 128  }
  0x18   :  { %308 = vsyncadd [#allocation3], 4294967168 }
  0x19   :  { %309 = dma.done.wait [#allocation6], 2048  }
  0x1a   :  { %310 = vsyncadd [#allocation6], 4294965248  ;;  %v317_v0 = vmov 0.0   ;;  %vm59_vm0 = vcmask 1043456   ;;  %v52_v1 = vld [vmem:[#allocation5 + $0x68] sm:$0xf] }
  0x1b   :  { %136 = vmatprep.mubr.f32.mxu0 %v317_v0  ;;  %207 = vmatprep.mubr.f32.mxu1 %v317_v0  ;;  %v54_v2 = vld [vmem:[#allocation5 + $0x78] sm:$0xf]  ;;  %v51_v3 = vld [vmem:[#allocation5 + $0x60] sm:$0xf]  ;;  %v53_v4 = vld [vmem:[#allocation5 + $0x70] sm:$0xf] }
  0x1c   :  { %235 = vmatprep.subr.msk.mxu0 %vm59_vm0, %v52_v1  ;;  %238 = vmatprep.subr.msk.mxu1 %vm59_vm0, %v54_v2  ;;  %v48_v5 = vld [vmem:[#allocation5 + $0x48] sm:$0xff]  ;;  %v50_v6 = vld [vmem:[#allocation5 + $0x58] sm:$0xff]  ;;  %v47_v7 = vld [vmem:[#allocation5 + $0x40] sm:$0xff]  ;;  %vm55_vm1 = vcmask 228352   ;;  %s318_s0 = smov [#allocation7]   ;;  %vm217_vm2 = vcmask 64512  }
  0x1d   :  { %236 = vmatpush1.msk.msra.mxu0 %vm59_vm0, %v51_v3  ;;  %239 = vmatpush1.msk.msra.mxu1 %vm59_vm0, %v53_v4  ;;  %v49_v8 = vld [vmem:[#allocation5 + $0x50] sm:$0xff]  ;;  %v44_v9 = vld [vmem:[#allocation5 + $0x28] sm:$0xff]  ;;  %v46_v10 = vld [vmem:[#allocation5 + $0x38] sm:$0xff]  ;;  %s225_s1 = sshll.u32 %s318_s0, 4  ;;  %s226_s1 = int_to_ptr.vmem [resolvable:$true] %s225_s1 }
  0x1e   :  { %98 = vmatprep.subr.mxu0 %v48_v5  ;;  %169 = vmatprep.subr.mxu1 %v50_v6  ;;  %v43_v11 = vld [vmem:[#allocation5 + $0x20] sm:$0xff]  ;;  %v45_v12 = vld [vmem:[#allocation5 + $0x30] sm:$0xff]  ;;  %v40_v13 = vld [vmem:[#allocation5 + $0x8] sm:$0xff]  ;;  %s287_s21 = scalar_lea.vmem %s226_s1, 512  ;;  %p292_p11 = scmp.lt.s32.totalorder %s226_s1, %s226_s1 }
  0x1f   :  { %99 = vmatpush1.msra.mxu0 %v47_v7  ;;  %170 = vmatpush1.msra.mxu1 %v49_v8  ;;  %v42_v14 = vld [vmem:[#allocation5 + $0x18] sm:$0xff]  ;;  %v39_v15 = vld [vmem:[#allocation5] sm:$0xff]  ;;  %v41_v16 = vld [vmem:[#allocation5 + $0x10] sm:$0xff]  ;;  %p288_p10 = scmp.ne.s32.totalorder %s226_s1, %s287_s21  ;;  %p293_p12 = scmp.lt.s32.totalorder %s287_s21, %s287_s21 }
  0x20   :  { %100 = vmatprep.subr.mxu0 %v44_v9  ;;  %171 = vmatprep.subr.mxu1 %v46_v10  ;;  %v38_v17 = vld [vmem:[#allocation2] sm:$0xff] }
  0x21   :  { %101 = vmatpush1.msra.mxu0 %v43_v11  ;;  %172 = vmatpush1.msra.mxu1 %v45_v12  ;;  %p294_p13 = por %p293_p12, %p292_p11 }
  0x22   :  { %102 = vmatprep.subr.mxu0 %v40_v13  ;;  %173 = vmatprep.subr.mxu1 %v42_v14 }
  0x23   :  { %103 = vmatpush1.msra.mxu0 %v39_v15  ;;  %174 = vmatpush1.msra.mxu1 %v41_v16  ;;  %p295_p0 = pnand %p294_p13, %p288_p10 }
  0x24   :  { %237 = vmatmul.mubr.msk.f32.vlgmr.msra.gmra.mxu0 %vm55_vm1, %v38_v17  ;;  %240 = vmatmul.mubr.msk.f32.vlgmr.msra.gmra.mxu1 %vm55_vm1, %v38_v17 }
  0xe4   :  { %v138_v18 = vpop.f32.mrf.mxu0  ;;  %v209_v19 = vpop.f32.mrf.mxu1 }
  0xe5   :  { %214 = vst [vmem:[#allocation7] sm:$0xff] %v138_v18  ;;  %216 = vst [vmem:[#allocation7 + $0x10] sm:$0xff] %v209_v19 }
  0xe6   :  { %v140_v20 = vpop.f32.mrf.mxu0  ;;  %v211_v21 = vpop.f32.mrf.mxu1 }
  0xe7   :  { %215 = vst [vmem:[#allocation7 + $0x8] sm:$0xff] %v140_v20  ;;  %218 = vst.msk [vmem:[#allocation7 + $0x18] sm:$0xff] %vm217_vm2, %v211_v21 }
  0xe8   :  { %298 = shalt.err (!%p295_p0)
}
  0xe9   :  { %228 = dma.vmem_to_hbm [thread:$0]  %s226_s1, 512, %s345_s2, [#allocation4]  }
  0xea   :  { %311 = dma.done.wait [#allocation4], 512  }
  0xeb   :  { %312 = vsyncadd [#allocation4], 4294966784 }
  0xec   :  { %232 = vsyncpa [#allocation3], 1 }
  0xed   :  { %233 = vsyncpa [#allocation6], 1 }
  0xee   :  { %234 = vsyncpa [#allocation4], 1 }

</bundles_post_ra>
